<compile_context>
chip_gen: v7x
topology: tpu7x:2x2x1
jax: 0.10.0
libtpu: 0.0.40
codegen_flags: <defaults>
</compile_context>

<pallas_src>
import functools

import numpy as np
import jax
import jax.numpy as jnp
from jax import lax
from jax.experimental import pallas as pl
from jax.experimental.pallas import tpu as pltpu


def _round_up(x, m):
    return ((x + m - 1) // m) * m


def _focal_loss_kernel(logit_ref, target_ref, out_ref, acc_ref, *,
                       alpha, gamma, eps):
    # logit_ref : (1, C, t_s, 128) probabilities (caller dtype, HW on sublane+lane)
    # target_ref: (1, 1, t_s, 128) int8/int32 class index (-1 on padded positions)
    # out_ref   : (1, 1, 1, 1)     f32 per-(sample, chunk) partial sum (resident over j)
    # acc_ref   : (t_s, 128)       f32 dense running accumulator (scratch)
    j = pl.program_id(2)

    @pl.when(j == 0)
    def _():
        acc_ref[...] = jnp.zeros_like(acc_ref)

    tgt = target_ref[0, 0].astype(jnp.int32)                      # (t_s, 128)

    # Fused pt / alpha gather: one compare per class, reused for both selects.
    # alpha[cls] is a Python constant -> no alpha array load, no broadcast.
    pt = jnp.zeros(tgt.shape, jnp.float32)
    alpha_sel = jnp.zeros(tgt.shape, jnp.float32)
    for cls in range(len(alpha)):
        m = tgt == cls
        # Cast AFTER the DMA so bf16 callers only move half the HBM bytes.
        pt = jnp.where(m, logit_ref[0, cls].astype(jnp.float32), pt)
        alpha_sel = jnp.where(m, jnp.float32(alpha[cls]), alpha_sel)

    # Padded positions (target == -1) keep pt = 0 and alpha_sel = 0, so
    # logpt = 0 and the loss contribution is exactly 0 -> no tail mask needed.
    pt = pt + eps
    logpt = alpha_sel * jnp.log(pt)
    one_minus_pt = 1.0 - pt
    if float(gamma).is_integer():
        focal = lax.integer_pow(one_minus_pt, int(gamma))
    else:
        # TODO(synk): non-integer gamma with (1 - pt) < 0 differs from
        # torch.pow (torch returns NaN there); we clamp at 1e-30 instead.
        focal = jnp.exp(gamma * jnp.log(jnp.maximum(one_minus_pt, 1e-30)))

    acc_ref[...] += -1.0 * focal * logpt

    @pl.when(j == pl.num_programs(2) - 1)
    def _():
        out_ref[...] = jnp.sum(acc_ref[...]).reshape(1, 1, 1, 1)


def focal_loss_ori(logit, target, alpha, gamma=2.0, size_average=True,
                   eps=1e-6):
    """Pallas implementation of FocalLoss_Ori.forward (accelerator path).

    `alpha` must be static per-class weights (as in the torch module buffer).
    """
    alpha_t = tuple(float(a) for a in
                    np.asarray(alpha, dtype=np.float32).reshape(-1))

    if logit.ndim > 2:
        n, c = logit.shape[0], logit.shape[1]
        logit3 = logit.reshape(n, c, -1)               # (N, C, HW): no transpose
    else:
        m, c = logit.shape
        n = 1
        logit3 = jnp.transpose(logit, (1, 0)).reshape(1, c, m)
    assert len(alpha_t) == c
    hw = logit3.shape[-1]
    total_rows = n * hw
    target2 = target.reshape(n, hw).astype(jnp.int32)

    lane = 128
    lbytes = jnp.dtype(logit3.dtype).itemsize
    sub_align = max(8, 32 // lbytes)                   # 8 for f32, 16 for bf16
    num_rows = pl.cdiv(hw, lane)                       # rows of 128 lanes

    # Sublane tile: keep the double-buffered logit block around <= ~4 MiB per
    # buffer (safe on v7x's 64 MiB VMEM) but never bigger than the data.
    blk_budget = 4 * 1024 * 1024
    t_s = blk_budget // (c * lane * lbytes)
    t_s = min(128, max(sub_align, (t_s // sub_align) * sub_align))
    t_s = min(t_s, _round_up(num_rows, sub_align))

    # int8 targets shrink HBM bytes; only when their (32, 128) tiling fits.
    use_i8 = (c <= 127) and (t_s % 32 == 0)
    tgt_dtype = jnp.int8 if use_i8 else jnp.int32
    tbytes = jnp.dtype(tgt_dtype).itemsize

    # v7x megacore: if the batch axis gives no parallelism, split HW into two
    # parallel chunks (no effect on single-TC v5e/v6e).
    blocks = pl.cdiv(num_rows, t_s)
    num_par = 2 if (n == 1 and blocks >= 2) else 1
    chunk = t_s * num_par
    s_pad = _round_up(num_rows, chunk)
    steps = s_pad // chunk
    hw_pad = s_pad * lane

    # Pad logits with zeros and targets with -1 so every block is fully
    # in-bounds and padded positions contribute exactly zero loss.
    if hw_pad != hw:
        logit3 = jnp.pad(logit3, ((0, 0), (0, 0), (0, hw_pad - hw)))
        target2 = jnp.pad(target2, ((0, 0), (0, hw_pad - hw)),
                          constant_values=-1)
    logit4 = logit3.reshape(n, c, s_pad, lane)
    target4 = target2.astype(tgt_dtype).reshape(n, 1, s_pad, lane)

    kernel = functools.partial(_focal_loss_kernel, alpha=alpha_t, gamma=gamma,
                               eps=eps)
    grid = (n, num_par, steps)

    # VMEM limit derived from the actual (double-buffered) block sizes.
    blk_logit = c * t_s * lane * lbytes
    blk_tgt = t_s * lane * tbytes
    vmem_need = 2 * (blk_logit + blk_tgt) + t_s * lane * 4
    vmem_limit = int(min(64 << 20, max(16 << 20, vmem_need + (16 << 20))))

    elems = n * s_pad * lane
    cost = pl.CostEstimate(
        flops=elems * (3 * c + 8),
        transcendentals=elems * (1 if float(gamma).is_integer() else 3),
        bytes_accessed=(n * c * s_pad * lane * lbytes
                        + n * s_pad * lane * tbytes + n * num_par * 4))

    partials = pl.pallas_call(
        kernel,
        out_shape=jax.ShapeDtypeStruct((n, num_par, 1, 1), jnp.float32),
        grid_spec=pltpu.PrefetchScalarGridSpec(
            num_scalar_prefetch=0,
            grid=grid,
            in_specs=[
                pl.BlockSpec((1, c, t_s, lane),
                             lambda i, p, j: (i, 0, p * steps + j, 0)),
                pl.BlockSpec((1, 1, t_s, lane),
                             lambda i, p, j: (i, 0, p * steps + j, 0)),
            ],
            out_specs=pl.BlockSpec((1, 1, 1, 1), lambda i, p, j: (i, p, 0, 0)),
            scratch_shapes=[pltpu.VMEM((t_s, lane), jnp.float32)],
        ),
        compiler_params=pltpu.CompilerParams(
            dimension_semantics=("parallel", "parallel", "arbitrary"),
            vmem_limit_bytes=vmem_limit),
        cost_estimate=cost,
    )(logit4, target4)

    total = jnp.sum(partials)
    if size_average:
        total = total / float(total_rows)
    return total


def _reference_focal_loss(logit, target, alpha, gamma, eps, size_average=True):
    if logit.ndim > 2:
        n, c = logit.shape[0], logit.shape[1]
        l2 = logit.reshape(n, c, -1)
        l2 = jnp.transpose(l2, (0, 2, 1)).reshape(-1, c)
    else:
        l2 = logit
    t = target.reshape(-1).astype(jnp.int32)
    pt = jnp.take_along_axis(l2.astype(jnp.float32), t[:, None], axis=1)[:, 0] + eps
    logpt = jnp.log(pt)
    a = jnp.asarray(alpha, jnp.float32)[t]
    logpt = a * logpt
    loss = -1.0 * jnp.power(1.0 - pt, gamma) * logpt
    return loss.mean() if size_average else loss.sum()


if __name__ == "__main__":
    # Module config (FocalLoss_Ori with a 4-class list alpha).
    num_class = 4
    alpha = [0.1, 0.2, 0.3, 0.4]
    gamma = 2.0
    eps = 1e-6

    # Inputs: NCHW probabilities (the module logs the gathered value directly,
    # so it expects probabilities, not raw logits) and integer targets.
    key = jax.random.PRNGKey(0)
    k1, k2 = jax.random.split(key)
    N, C, H, W = 2, num_class, 16, 16
    raw = jax.random.normal(k1, (N, C, H, W), dtype=jnp.float32)
    probs = jax.nn.softmax(raw, axis=1)                  # (2, 4, 16, 16)
    target = jax.random.randint(k2, (N, H, W), 0, C, dtype=jnp.int32)

    loss = focal_loss_ori(probs, target, alpha, gamma=gamma,
                          size_average=True, eps=eps)
    loss = jax.block_until_ready(loss)

    ref = _reference_focal_loss(probs, target, alpha, gamma, eps)
    ref = jax.block_until_ready(ref)

    assert jnp.allclose(loss, ref, rtol=1e-5, atol=1e-6), (loss, ref)
    print("KERNEL_OK")
</pallas_src>

<mosaic_0001>
module attributes {stable_mosaic.version = 11 : i64} {
  func.func @_focal_loss_kernel(%arg0: i32, %arg1: i32, %arg2: i32, %arg3: memref<1x4x8x128xf32, #tpu.memory_space<vmem>>, %arg4: memref<1x1x8x128xi32, #tpu.memory_space<vmem>>, %arg5: memref<1x1x1x1xf32, #tpu.memory_space<vmem>>, %arg6: memref<8x128xf32, #tpu.memory_space<vmem>>) attributes {dimension_semantics = [#tpu.dimension_semantics<parallel>, #tpu.dimension_semantics<parallel>, #tpu.dimension_semantics<arbitrary>], iteration_bounds = array<i64: 2, 1, 1>, scalar_prefetch = 0 : i64, scratch_operands = 1 : i64, tpu.core_type = #tpu.core_type<tc>, window_params = [{transform_indices = @transform_0, window_bounds = array<i64: 1, 4, 8, 128>}, {transform_indices = @transform_1, window_bounds = array<i64: 1, 1, 8, 128>}, {transform_indices = @transform_2, window_bounds = array<i64: 1, 1, 1, 1>}]} {
    %c0_i32 = arith.constant 0 : i32
    %0 = arith.cmpi eq, %arg2, %c0_i32 : i32
    %1 = arith.extui %0 : i1 to i32
    %c0_i32_0 = arith.constant 0 : i32
    %2 = arith.cmpi ne, %1, %c0_i32_0 : i32
    scf.if %2 {
      %cst_32 = arith.constant 0.000000e+00 : f32
      %51 = vector.broadcast %cst_32 : f32 to vector<8x128xf32>
      %c0_33 = arith.constant 0 : index
      %c0_34 = arith.constant 0 : index
      %52 = vector.load %arg6[%c0_33, %c0_34] : memref<8x128xf32, #tpu.memory_space<vmem>>, vector<8x128xf32>
      tpu.vector_store %arg6[%c0_33, %c0_34], %51 {strides = array<i32>} : memref<8x128xf32, #tpu.memory_space<vmem>>, vector<8x128xf32>,
    } else {
    }
    %c0 = arith.constant 0 : index
    %c0_1 = arith.constant 0 : index
    %c0_2 = arith.constant 0 : index
    %c0_3 = arith.constant 0 : index
    %3 = vector.load %arg4[%c0, %c0_1, %c0_2, %c0_3] : memref<1x1x8x128xi32, #tpu.memory_space<vmem>>, vector<1x1x8x128xi32>
    %4 = vector.shape_cast %3 : vector<1x1x8x128xi32> to vector<8x128xi32>
    %cst = arith.constant 0.000000e+00 : f32
    %5 = vector.broadcast %cst : f32 to vector<8x128xf32>
    %cst_4 = arith.constant 0.000000e+00 : f32
    %6 = vector.broadcast %cst_4 : f32 to vector<8x128xf32>
    %c0_i32_5 = arith.constant 0 : i32
    %7 = vector.broadcast %c0_i32_5 : i32 to vector<8x128xi32>
    %8 = arith.cmpi eq, %4, %7 : vector<8x128xi32>
    %c0_6 = arith.constant 0 : index
    %c0_7 = arith.constant 0 : index
    %c0_8 = arith.constant 0 : index
    %c0_9 = arith.constant 0 : index
    %9 = vector.load %arg3[%c0_6, %c0_7, %c0_8, %c0_9] : memref<1x4x8x128xf32, #tpu.memory_space<vmem>>, vector<1x1x8x128xf32>
    %10 = vector.shape_cast %9 : vector<1x1x8x128xf32> to vector<8x128xf32>
    %11 = arith.select %8, %10, %5 : vector<8x128xi1>, vector<8x128xf32>
    %cst_10 = arith.constant 1.000000e-01 : f32
    %12 = vector.broadcast %cst_10 : f32 to vector<8x128xf32>
    %13 = arith.select %8, %12, %6 : vector<8x128xi1>, vector<8x128xf32>
    %c1_i32 = arith.constant 1 : i32
    %14 = vector.broadcast %c1_i32 : i32 to vector<8x128xi32>
    %15 = arith.cmpi eq, %4, %14 : vector<8x128xi32>
    %c0_11 = arith.constant 0 : index
    %c1 = arith.constant 1 : index
    %c0_12 = arith.constant 0 : index
    %c0_13 = arith.constant 0 : index
    %16 = vector.load %arg3[%c0_11, %c1, %c0_12, %c0_13] : memref<1x4x8x128xf32, #tpu.memory_space<vmem>>, vector<1x1x8x128xf32>
    %17 = vector.shape_cast %16 : vector<1x1x8x128xf32> to vector<8x128xf32>
    %18 = arith.select %15, %17, %11 : vector<8x128xi1>, vector<8x128xf32>
    %cst_14 = arith.constant 2.000000e-01 : f32
    %19 = vector.broadcast %cst_14 : f32 to vector<8x128xf32>
    %20 = arith.select %15, %19, %13 : vector<8x128xi1>, vector<8x128xf32>
    %c2_i32 = arith.constant 2 : i32
    %21 = vector.broadcast %c2_i32 : i32 to vector<8x128xi32>
    %22 = arith.cmpi eq, %4, %21 : vector<8x128xi32>
    %c0_15 = arith.constant 0 : index
    %c2 = arith.constant 2 : index
    %c0_16 = arith.constant 0 : index
    %c0_17 = arith.constant 0 : index
    %23 = vector.load %arg3[%c0_15, %c2, %c0_16, %c0_17] : memref<1x4x8x128xf32, #tpu.memory_space<vmem>>, vector<1x1x8x128xf32>
    %24 = vector.shape_cast %23 : vector<1x1x8x128xf32> to vector<8x128xf32>
    %25 = arith.select %22, %24, %18 : vector<8x128xi1>, vector<8x128xf32>
    %cst_18 = arith.constant 3.000000e-01 : f32
    %26 = vector.broadcast %cst_18 : f32 to vector<8x128xf32>
    %27 = arith.select %22, %26, %20 : vector<8x128xi1>, vector<8x128xf32>
    %c3_i32 = arith.constant 3 : i32
    %28 = vector.broadcast %c3_i32 : i32 to vector<8x128xi32>
    %29 = arith.cmpi eq, %4, %28 : vector<8x128xi32>
    %c0_19 = arith.constant 0 : index
    %c3 = arith.constant 3 : index
    %c0_20 = arith.constant 0 : index
    %c0_21 = arith.constant 0 : index
    %30 = vector.load %arg3[%c0_19, %c3, %c0_20, %c0_21] : memref<1x4x8x128xf32, #tpu.memory_space<vmem>>, vector<1x1x8x128xf32>
    %31 = vector.shape_cast %30 : vector<1x1x8x128xf32> to vector<8x128xf32>
    %32 = arith.select %29, %31, %25 : vector<8x128xi1>, vector<8x128xf32>
    %cst_22 = arith.constant 4.000000e-01 : f32
    %33 = vector.broadcast %cst_22 : f32 to vector<8x128xf32>
    %34 = arith.select %29, %33, %27 : vector<8x128xi1>, vector<8x128xf32>
    %cst_23 = arith.constant 9.99999997E-7 : f32
    %35 = vector.broadcast %cst_23 : f32 to vector<8x128xf32>
    %36 = arith.addf %32, %35 : vector<8x128xf32>
    %37 = math.log %36 : vector<8x128xf32>
    %38 = arith.mulf %34, %37 : vector<8x128xf32>
    %cst_24 = arith.constant 1.000000e+00 : f32
    %39 = vector.broadcast %cst_24 : f32 to vector<8x128xf32>
    %40 = arith.subf %39, %36 : vector<8x128xf32>
    %41 = arith.mulf %40, %40 : vector<8x128xf32>
    %c0_25 = arith.constant 0 : index
    %c0_26 = arith.constant 0 : index
    %42 = vector.load %arg6[%c0_25, %c0_26] : memref<8x128xf32, #tpu.memory_space<vmem>>, vector<8x128xf32>
    %cst_27 = arith.constant -1.000000e+00 : f32
    %43 = vector.broadcast %cst_27 : f32 to vector<8x128xf32>
    %44 = arith.mulf %43, %41 : vector<8x128xf32>
    %45 = arith.mulf %44, %38 : vector<8x128xf32>
    %46 = arith.addf %42, %45 : vector<8x128xf32>
    %c0_28 = arith.constant 0 : index
    %c0_29 = arith.constant 0 : index
    %47 = vector.load %arg6[%c0_28, %c0_29] : memref<8x128xf32, #tpu.memory_space<vmem>>, vector<8x128xf32>
    tpu.vector_store %arg6[%c0_28, %c0_29], %46 {strides = array<i32>} : memref<8x128xf32, #tpu.memory_space<vmem>>, vector<8x128xf32>,
    %c0_i32_30 = arith.constant 0 : i32
    %48 = arith.cmpi eq, %arg2, %c0_i32_30 : i32
    %49 = arith.extui %48 : i1 to i32
    %c0_i32_31 = arith.constant 0 : i32
    %50 = arith.cmpi ne, %49, %c0_i32_31 : i32
    scf.if %50 {
      %c0_32 = arith.constant 0 : index
      %c0_33 = arith.constant 0 : index
      %51 = vector.load %arg6[%c0_32, %c0_33] : memref<8x128xf32, #tpu.memory_space<vmem>>, vector<8x128xf32>
      %52 = vector.shape_cast %51 : vector<8x128xf32> to vector<1x8x128xf32>
      %cst_34 = arith.constant dense<0.000000e+00> : vector<1xf32>
      %53 = vector.multi_reduction <add>, %52, %cst_34 [1, 2] : vector<1x8x128xf32> to vector<1xf32>
      %54 = vector.shape_cast %53 : vector<1xf32> to vector<1x1x1xf32>
      %55 = vector.extract %54[0, 0, 0] : f32 from vector<1x1x1xf32>
      %56 = vector.broadcast %55 : f32 to vector<1x1x1x1xf32>
      %c0_35 = arith.constant 0 : index
      %c0_36 = arith.constant 0 : index
      %c0_37 = arith.constant 0 : index
      %c0_38 = arith.constant 0 : index
      %57 = vector.load %arg5[%c0_35, %c0_36, %c0_37, %c0_38] : memref<1x1x1x1xf32, #tpu.memory_space<vmem>>, vector<1x1x1x1xf32>
      tpu.vector_store %arg5[%c0_35, %c0_36, %c0_37, %c0_38], %56 {strides = array<i32>} : memref<1x1x1x1xf32, #tpu.memory_space<vmem>>, vector<1x1x1x1xf32>,
    } else {
    }
    return
  }
  func.func @transform_0(%arg0: i32, %arg1: i32, %arg2: i32) -> (i32, i32, i32, i32) {
    %c1_i32 = arith.constant 1 : i32
    %0 = arith.muli %arg1, %c1_i32 : i32
    %1 = arith.addi %0, %arg2 : i32
    %c0_i32 = arith.constant 0 : i32
    %c0_i32_0 = arith.constant 0 : i32
    %c0_i32_1 = arith.constant 0 : i32
    return %arg0, %c0_i32, %1, %c0_i32_0 : i32, i32, i32, i32
  }
  func.func @transform_1(%arg0: i32, %arg1: i32, %arg2: i32) -> (i32, i32, i32, i32) {
    %c1_i32 = arith.constant 1 : i32
    %0 = arith.muli %arg1, %c1_i32 : i32
    %1 = arith.addi %0, %arg2 : i32
    %c0_i32 = arith.constant 0 : i32
    %c0_i32_0 = arith.constant 0 : i32
    %c0_i32_1 = arith.constant 0 : i32
    return %arg0, %c0_i32, %1, %c0_i32_0 : i32, i32, i32, i32
  }
  func.func @transform_2(%arg0: i32, %arg1: i32, %arg2: i32) -> (i32, i32, i32, i32) {
    %c0_i32 = arith.constant 0 : i32
    %c0_i32_0 = arith.constant 0 : i32
    %c0_i32_1 = arith.constant 0 : i32
    return %arg0, %arg1, %c0_i32, %c0_i32_0 : i32, i32, i32, i32
  }
}

</mosaic_0001>

<bundles_post_ra>
// kernel: tpu_custom_call.1
= control target key start
LH: loop header
LB: loop body
LE: loop exit
PB: predicated region body
PF: predicated region fallthrough
CT: control target
= control target key end

     0   :  { %7 = vsyncpa [#allocation4], 0  ;;  %s783_s0 = inlined_call_operand.hbm [shape: f32[2,4,8,128], index: 0, kind: input, shape index: {}]   ;;  %s784_s1 = inlined_call_operand.hbm [shape: s32[2,1,8,128], index: 1, kind: input, shape index: {}]   ;;  %s785_s2 = inlined_call_operand.vmem [shape: f32[2,1,1,1], index: 2, kind: output, shape index: {}]  }
   0x1   :  { %9 = vsyncpa [#allocation4 + $0x1], 0 }
   0x2   :  { %10 = vsyncpa [#allocation6], 0 }
   0x3   :  { %12 = vsyncpa [#allocation6 + $0x1], 0  ;;  %s619_s9 = smov 0   ;;  %s621_s10 = smov 0  }
   0x4   :  { %s623_s11 = smov 0   ;;  %s625_s12 = smov 0  }
   0x5   :  { %s627_s13 = smov 0   ;;  %s629_s14 = smov 0  }
   0x6 LB: > { %s398_s15 = sadd.s32 4294967295, %s597_s14   ;;  %s37_s16 = sadd.s32 1, %s593_s13  ;;  %s597_s14 = sphi %s629_s14, %s18_s14   ;;  %s593_s13 = sphi %s627_s13, %s797_s13   ;;  %s589_s12 = sphi %s625_s12, %s796_s12   ;;  %s585_s11 = sphi %s623_s11, %s795_s11   ;;  %s581_s10 = sphi %s621_s10, %s794_s10   ;;  %s577_s9 = sphi %s619_s9, %s793_s9  }
   0x7   : > { %p39_p0 = scmp.ge.s32.totalorder %s37_s16, 2  ;;  %s48_s17 = sadd.s32 1, %s585_s11 }
   0x8   : > { %p55_p1 = scmp.ne.s32.totalorder %s585_s11, %s581_s10  ;;  %p56_p2 = scmp.eq.s32.totalorder %s597_s14, 0 }
   0x9   : > { %s799_s16 = smov (%p39_p0, %s37_s16), 0  ;;  %p61_p4 = scmp.ne.s32.totalorder %s581_s10, %s577_s9 }
   0xa   : > { %p655_p3 = por %p56_p2, %p55_p1  ;;  %s43_s19 = ssub.s32 %s593_s13, %s799_s16 }
   0xb   : > { %p62_p5 = scmp.eq.s32.totalorder %s398_s15, 0  ;;  %p46_p6 = scmp.eq.s32.totalorder %s43_s19, 0 }
   0xc   : > { %p429_p8 = scmp.lt.s32.totalorder %s597_s14, 2  ;;  %s671_s22 = sand.u32 1, %s585_s11  }
   0xd   : > { %p662_p7 = por %p62_p5, %p61_p4  ;;  %s415_s23 = sshll.u32 %s593_s13, 9 }
   0xe   : > { %s668_s21 = scalar_select %p46_p6, %s585_s11, %s48_s17  }
   0xf   : > { %s788_s20 = scalar_select %p662_p7, 1, 0 }
  0x10   : > { %s402_s24 = sshll.u32 %s671_s22, 5  ;;  %s678_s27 = scalar_lea.hbm %s783_s0, %s415_s23 }
  0x11   : > { %s147_s28 = scalar_lea.vmem [#allocation3], %s402_s24  ;;  %p682_p9 = pnand %p429_p8, %p655_p3 }
  0x12   : > { %s156_s29 = sshll.u32 %s147_s28, 4  ;;  %s144_s3 = scalar_lea.sflag [#allocation4], %s671_s22  ;;  %s686_s29 = int_to_ptr.vmem [resolvable:$true] %s156_s29 }
  0x13   : > { %s483_s4 = scalar_lea.hbm %s678_s27, 512  ;;  %p485_p11 = pneg %p682_p9 }
  0x14   : > { %p484_p10 = scmp.ne.s32.totalorder %s678_s27, %s483_s4  ;;  %s488_s7 = scalar_lea.hbm %s783_s0, 1024 }
  0x15   : > { %p489_p0 = scmp.lt.u32.totalorder %s678_s27, %s783_s0  ;;  %p490_p1 = scmp.lt.u32.totalorder %s488_s7, %s483_s4 }
  0x16   : > { %p486_p12 = pnand %p485_p11, %p484_p10  ;;  %p492_p3 = scmp.lt.u32.totalorder %s483_s4, %s678_s27 }
  0x17   : > { %p491_p2 = por %p490_p1, %p489_p0 }
  0x18   : > { %p487_p13 = pneg %p486_p12 }
  0x19   : > { %p493_p4 = por %p492_p3, %p491_p2 }
  0x1b   : > { %p494_p5 = pnand %p493_p4, %p487_p13 }
  0x1d   : > { %497 = shalt.err (!%p494_p5)
}
  0x1e   : > { %s498_s15 = scalar_lea.vmem %s686_s29, 512  ;;  %s599_s17 = smov [#allocation3]  }
  0x1f   : > { %p499_p6 = scmp.ne.s32.totalorder %s686_s29, %s498_s15  ;;  %s503_s18 = sshll.u32 %s599_s17, 4  ;;  %s504_s18 = int_to_ptr.vmem [resolvable:$false] %s503_s18 }
  0x20   : > { %s505_s19 = scalar_lea.vmem %s504_s18, 1024  ;;  %p506_p12 = scmp.lt.s32.totalorder %s686_s29, %s504_s18 }
  0x21   : > { %p501_p8 = pnand %p499_p6, %p485_p11  ;;  %p507_p0 = scmp.lt.s32.totalorder %s505_s19, %s498_s15 }
  0x23   : > { %p502_p10 = pneg %p501_p8  ;;  %p508_p1 = por %p507_p0, %p506_p12 }
  0x25   : > { %p509_p2 = pnand %p508_p1, %p502_p10 }
  0x27   : > { %512 = shalt.err (!%p509_p2)
}
  0x28   : > { %s600_s23 = smov 128   ;;  %s601_s24 = smov 8  }
  0x29   : > { %425 = dma.hbm_to_vmem [thread:$0]  (!%p682_p9), %s678_s27, 512, %s686_s29, %s144_s3, %s600_s23, %s600_s23, %s601_s24  }
  0x2a   : > { %p407_p13 = scmp.ge.s32.totalorder %s597_s14, 1  ;;  %p184_p3 = scmp.lt.s32.totalorder %s597_s14, 3 }
  0x2b   : > { %s405_s25 = sshll.u32 %s671_s22, 3  ;;  %s406_s28 = sshll.u32 %s593_s13, 7 }
  0x2c   : > { %p719_p4 = pnand %p407_p13, %p184_p3  ;;  %s170_s4 = scalar_lea.vmem [#allocation5], %s405_s25 }
  0x2d   : > { %s179_s5 = sshll.u32 %s170_s4, 4  ;;  %s727_s8 = scalar_lea.hbm %s784_s1, %s406_s28  ;;  %s180_s5 = int_to_ptr.vmem [resolvable:$true] %s179_s5 }
  0x2e   : > { %s790_s26 = scalar_select %p719_p4, 1, 0 }
  0x2f   : > { %s167_s27 = scalar_lea.sflag [#allocation6], %s671_s22  ;;  %s513_s29 = scalar_lea.hbm %s727_s8, 128 }
  0x30   : > { %p514_p5 = scmp.ne.s32.totalorder %s727_s8, %s513_s29  ;;  %s518_s15 = scalar_lea.hbm %s784_s1, 256 }
  0x31   : > { %p519_p10 = scmp.lt.u32.totalorder %s727_s8, %s784_s1  ;;  %p520_p12 = scmp.lt.u32.totalorder %s518_s15, %s513_s29 }
  0x32   : > { %p516_p6 = pnand %p514_p5, %p485_p11  ;;  %p522_p1 = scmp.lt.u32.totalorder %s513_s29, %s727_s8 }
  0x33   : > { %p521_p0 = por %p520_p12, %p519_p10 }
  0x34   : > { %p517_p8 = pneg %p516_p6 }
  0x35   : > { %p523_p2 = por %p522_p1, %p521_p0 }
  0x37   : > { %p524_p13 = pnand %p523_p2, %p517_p8 }
  0x39   : > { %527 = shalt.err (!%p524_p13)
}
  0x3a   : > { %s528_s22 = scalar_lea.vmem %s180_s5, 128  ;;  %s602_s19 = smov [#allocation5]  }
  0x3b   : > { %p529_p3 = scmp.ne.s32.totalorder %s180_s5, %s528_s22  ;;  %s533_s23 = sshll.u32 %s602_s19, 4  ;;  %s534_s23 = int_to_ptr.vmem [resolvable:$false] %s533_s23 }
  0x3c   : > { %s535_s24 = scalar_lea.vmem %s534_s23, 256  ;;  %p536_p7 = scmp.lt.s32.totalorder %s180_s5, %s534_s23 }
  0x3d   : > { %p531_p5 = pnand %p529_p3, %p485_p11  ;;  %p537_p4 = scmp.lt.s32.totalorder %s535_s24, %s528_s22 }
  0x3f   : > { %p532_p6 = pneg %p531_p5  ;;  %p538_p10 = por %p537_p4, %p536_p7 }
  0x41   : > { %p539_p12 = pnand %p538_p10, %p532_p6 }
  0x43   : > { %542 = shalt.err (!%p539_p12)
}
  0x44   : > { %428 = dma.hbm_to_vmem [thread:$0]  (!%p682_p9), %s727_s8, 128, %s180_s5, %s167_s27  }
  0x45   : > { %p791_p8 = scmp.ne.s32.totalorder %s790_s26, 0 }
  0x46   : > { %s190_s25 = sand.u32 (!%p791_p8), 1, %s581_s10   ;;  %p792_p11 = scmp.ne.s32.totalorder (!%p791_p8), %s788_s20, 0 }
  0x47   : > { %188 = sbr.rel (%p791_p8) target bundleno = 313 (0x139), region = 28  ;;  %s408_s28 = sshll.u32 (!%p791_p8), %s190_s25, 5 }
  0x48   : > { %s191_s4 = scalar_lea.sflag (!%p791_p8), [#allocation4], %s190_s25  ;;  %s194_s6 = scalar_lea.vmem (!%p791_p8), [#allocation3], %s408_s28 }
  0x4e   : > { %568 = dma.done.wait (%p792_p11), %s191_s4, 512  }
  0x4f   : > { %570 = vsyncadd (%p792_p11), %s191_s4, 4294966784  ;;  %s409_s7 = sshll.u32 %s190_s25, 3  ;;  %s200_s29 = scalar_lea.sflag [#allocation6], %s190_s25 }
  0x50   : > { %s203_s30 = scalar_lea.vmem [#allocation5], %s409_s7 }
  0x51   : > { %572 = dma.done.wait (%p792_p11), %s200_s29, 128  }
  0x52   : > { %574 = vsyncadd (%p792_p11), %s200_s29, 4294967168  ;;  %v243_v0 = vld [vmem:[%s203_s30] sm:$0xff]  ;;  %v411_v3 = vld [vmem:[%s194_s6 + $0x10] sm:$0xff]  ;;  %v603_v10 = vmov 0.0   ;;  %p232_p7 = scmp.lt.s32.totalorder %s589_s12, 1  ;;  %vm288_vm4 = vcmask 0  }
  0x53   : > { %v245_v1 = vld [vmem:[%s194_s6] sm:$0xff]  ;;  %v410_v2 = vld [vmem:[%s194_s6 + $0x8] sm:$0xff]  ;;  %vm244_vm0 = vcmp.eq.s32.totalorder %v243_v0, 0  ;;  %vm248_vm1 = vcmp.eq.s32.totalorder %v243_v0, 1  ;;  %vm253_vm2 = vcmp.eq.s32.totalorder %v243_v0, 2  ;;  %vm258_vm3 = vcmp.eq.s32.totalorder %v243_v0, 3 }
  0x54   : > { %v246_v4 = vsel %vm244_vm0, %v245_v1, 0.0  ;;  %v412_v5 = vld [vmem:[%s194_s6 + $0x18] sm:$0xff]  ;;  %v247_v11 = vsel %vm244_vm0, 0.1, %v603_v10  ;;  %s801_s12 = smov (!%p232_p7, %s589_s12), 1 }
  0x55   : > { %v251_v6 = vsel %vm248_vm1, %v410_v2, %v246_v4  ;;  %v252_v13 = vsel %vm248_vm1, 0.2, %v247_v11  ;;  %s237_s5 = scalar_lea.vmem %s785_s2, %s801_s12 }
  0x56   : > { %v256_v7 = vsel %vm253_vm2, %v411_v3, %v251_v6  ;;  %v257_v14 = vsel %vm253_vm2, 0.3, %v252_v13 }
  0x57   : > { %v261_v8 = vsel %vm258_vm3, %v412_v5, %v256_v7  ;;  %v262_v17 = vsel %vm258_vm3, 0.4, %v257_v14 }
  0x58   : > { %v263_v9 = vadd.f32 1e-06, %v261_v8 }
  0x5a   : > { %481 = vlog2.f32 %v263_v9  ;;  %v267_v12 = vsub.f32 1.0, %v263_v9 }
  0x5c   : > { %v268_v15 = vmul.f32 %v267_v12, %v267_v12 }
  0x5e   : > { %v270_v19 = vmul.f32 -1.0, %v268_v15 }
  0x64   : > { %v482_v16 = vpop.eup %481 }
  0x65   : > { %v265_v18 = vmul.f32 0.6931472, %v482_v16 }
  0x67   : > { %v266_v20 = vmul.f32 %v265_v18, %v262_v17 }
  0x69   : > { %v271_v21 = vmul.f32 %v270_v19, %v266_v20 }
  0x6b   : > { %278 = vadd.xlane.f32.xlu0 %v271_v21 }
  0xf8   : > { %v279_v22 = vpop.xlane.xlu0 %278 }
  0xf9   : > { %v280_v23 = vrot.slane %v279_v22, 4 }
  0xfb   : > { %v281_v24 = vadd.f32 %v280_v23, %v279_v22 }
  0xfd   : > { %v282_v25 = vrot.slane %v281_v24, 2 }
  0xff   : > { %v283_v26 = vadd.f32 %v282_v25, %v281_v24 }
 0x101   : > { %v284_v27 = vrot.slane %v283_v26, 1 }
 0x103   : > { %v285_v28 = vadd.f32 %v284_v27, %v283_v26 }
 0x105   : > { %416 = vpush %v285_v28 }
 0x136   : > { %s417_s8 = spop %416 }
 0x137   : > { %v287_v29 = vstv %s417_s8 }
 0x138   : > { %289 = vst.msk [vmem:[%s237_s5] sm:$0x1] %vm288_vm4, %v287_v29 }
 0x139 PF: > { %s18_s14 = sadd.s32 1, %s597_s14   ;;  %s793_s9 = smov %s581_s10 }
 0x13a   : > { %p15_p9 = scmp.ge.s32.totalorder %s18_s14, 4   ;;  %s794_s10 = smov %s585_s11 }
 0x13b   : > { %s795_s11 = smov %s668_s21  ;;  %s796_s12 = smov %s593_s13 }
 0x13c   : > { %s797_s13 = smov %s799_s16  ;;  %17 = sbr.rel (!%p15_p9) target bundleno = 6 (0x6), region = 92 }
 0x143   :  { %313 = vsyncpa [#allocation4], 1 }
 0x144   :  { %315 = vsyncpa [#allocation4 + $0x1], 1 }
 0x145   :  { %316 = vsyncpa [#allocation6], 1 }
 0x146   :  { %318 = vsyncpa [#allocation6 + $0x1], 1 }

</bundles_post_ra>
